<compile_context>
chip_gen: v6e
topology: v6e:2x2x1
jax: 0.10.0
libtpu: 0.0.40
codegen_flags: <defaults>
</compile_context>

<pallas_src>
import jax
import jax.numpy as jnp
from jax import lax
from jax.experimental import pallas as pl
from jax.experimental.pallas import tpu as pltpu


def _to_weights_dtype_kernel(x_ref, w1_ref, w2_ref, b_ref, o_ref):
    # x: [bm, IN] f32.  Weights are K-major: w1 [IN, HID], w2 [HID, HID].
    x = x_ref[...]

    b1 = b_ref[0:1, :]  # [1, HID] f32, broadcast over rows (free VPU add)
    b2 = b_ref[1:2, :]

    # Linear 1: canonical contraction [bm, IN] x [IN, HID] -> [bm, HID], f32.
    h = lax.dot_general(
        x, w1_ref[...],
        dimension_numbers=(((1,), (0,)), ((), ())),
        preferred_element_type=jnp.float32,
    ) + b1

    # SiLU in f32: sigmoid rides the EUP slot, the multiply rides the VPU
    # (kept f32 on purpose — v5e has no bf16 VPU/EUP path).
    h = h * jax.nn.sigmoid(h)

    # Linear 2: canonical contraction [bm, HID] x [HID, HID] -> [bm, HID], f32.
    y = lax.dot_general(
        h, w2_ref[...],
        dimension_numbers=(((1,), (0,)), ((), ())),
        preferred_element_type=jnp.float32,
    ) + b2

    # The whole point of ToWeightsDType: cast the module OUTPUT to the
    # UNet weights dtype.
    o_ref[...] = y.astype(o_ref.dtype)


def to_weights_dtype_forward(x, w1_km, w2_km, b_packed,
                             dtype=jnp.bfloat16, batch_block=16):
    """Runs module(x).to(dtype) where module = Linear -> SiLU -> Linear (f32).

    x:        [B, IN]   f32
    w1_km:    [IN, HID] f32, K-major (= PyTorch linear_1.weight.T, done once at init)
    w2_km:    [HID, HID] f32, K-major (= PyTorch linear_2.weight.T, done once at init)
    b_packed: [2, HID]  f32, rows = (b1, b2)
    returns   [B, HID] in `dtype`.
    """
    B, IN = x.shape
    HID = w1_km.shape[1]
    assert w1_km.shape == (IN, HID)
    assert w2_km.shape == (HID, HID)
    assert b_packed.shape == (2, HID)

    bm = min(batch_block, B)
    assert B % bm == 0, "pad/batch B to a multiple of the batch block (16)"
    grid = (B // bm,)

    out_itemsize = jnp.dtype(dtype).itemsize
    cost = pl.CostEstimate(
        flops=2 * B * HID * (IN + HID),
        transcendentals=B * HID,  # one sigmoid per output element of layer 1
        bytes_accessed=(x.size * x.dtype.itemsize
                        + w1_km.size * w1_km.dtype.itemsize
                        + w2_km.size * w2_km.dtype.itemsize
                        + b_packed.size * b_packed.dtype.itemsize
                        + B * HID * out_itemsize),
    )

    return pl.pallas_call(
        _to_weights_dtype_kernel,
        out_shape=jax.ShapeDtypeStruct((B, HID), dtype),
        grid=grid,
        in_specs=[
            pl.BlockSpec((bm, IN), lambda i: (i, 0)),     # x: tiled over batch
            pl.BlockSpec((IN, HID), lambda i: (0, 0)),    # w1: resident
            pl.BlockSpec((HID, HID), lambda i: (0, 0)),   # w2: resident
            pl.BlockSpec((2, HID), lambda i: (0, 0)),     # packed biases: resident
        ],
        out_specs=pl.BlockSpec((bm, HID), lambda i: (i, 0)),  # lane-dense (HID % 128 == 0)
        compiler_params=pltpu.CompilerParams(
            dimension_semantics=("parallel",)),           # megacore sharding on v7x
        cost_estimate=cost,
    )(x, w1_km, w2_km, b_packed)


def _reference(x, w1_pt, b1, w2_pt, b2, dtype=jnp.bfloat16):
    # PyTorch semantics: f32 inner TimestepEmbedding, cast only the output.
    h = x @ w1_pt.T + b1
    h = h * jax.nn.sigmoid(h)
    y = h @ w2_pt.T + b2
    return y.astype(dtype)


if __name__ == "__main__":
    key = jax.random.PRNGKey(0)
    k_x, k_w1, k_b1, k_w2, k_b2 = jax.random.split(key, 5)

    # Small shapes consistent with a conditioning MLP.  B=32 = all conditioning
    # vectors of a step (multiple of 16 -> packed bf16 output stores, and a
    # 2-step parallel grid for v7x); HID=128 keeps the output lane-dense.
    B, IN, HID = 32, 32, 128

    x = jax.random.normal(k_x, (B, IN), dtype=jnp.float32)

    # Params in PyTorch nn.Linear layout ([out, in]), f32 like the original
    # TimestepEmbedding.
    w1_pt = jax.random.normal(k_w1, (HID, IN), dtype=jnp.float32) * 0.1
    b1 = jax.random.normal(k_b1, (HID,), dtype=jnp.float32) * 0.1
    w2_pt = jax.random.normal(k_w2, (HID, HID), dtype=jnp.float32) * 0.1
    b2 = jax.random.normal(k_b2, (HID,), dtype=jnp.float32) * 0.1

    # One-time, init-time layout change: K-major weights + packed biases.
    # This happens when the module is built, never per forward call.
    w1_km = jnp.asarray(w1_pt.T)          # [IN, HID]
    w2_km = jnp.asarray(w2_pt.T)          # [HID, HID]
    b_packed = jnp.stack([b1, b2], axis=0)  # [2, HID]

    out = to_weights_dtype_forward(x, w1_km, w2_km, b_packed, dtype=jnp.bfloat16)
    out = jax.block_until_ready(out)

    ref = _reference(x, w1_pt, b1, w2_pt, b2, dtype=jnp.bfloat16)
    assert out.shape == (B, HID)
    assert out.dtype == jnp.bfloat16
    assert jnp.allclose(out.astype(jnp.float32), ref.astype(jnp.float32),
                        atol=2e-2, rtol=2e-2)

    print("KERNEL_OK")
</pallas_src>

<mosaic_0001>
module attributes {stable_mosaic.version = 11 : i64} {
  func.func @_to_weights_dtype_kernel(%arg0: i32, %arg1: memref<16x32xf32, #tpu.memory_space<vmem>>, %arg2: memref<32x128xf32, #tpu.memory_space<vmem>>, %arg3: memref<128x128xf32, #tpu.memory_space<vmem>>, %arg4: memref<2x128xf32, #tpu.memory_space<vmem>>, %arg5: memref<16x128xbf16, #tpu.memory_space<vmem>>) attributes {dimension_semantics = [#tpu.dimension_semantics<parallel>], iteration_bounds = array<i64: 2>, scalar_prefetch = 0 : i64, scratch_operands = 0 : i64, tpu.core_type = #tpu.core_type<tc>, window_params = [{transform_indices = @transform_0, window_bounds = array<i64: 16, 32>}, {pipeline_mode = #tpu.pipeline_mode<synchronous>, transform_indices = @transform_1, window_bounds = array<i64: 32, 128>}, {pipeline_mode = #tpu.pipeline_mode<synchronous>, transform_indices = @transform_2, window_bounds = array<i64: 128, 128>}, {pipeline_mode = #tpu.pipeline_mode<synchronous>, transform_indices = @transform_3, window_bounds = array<i64: 2, 128>}, {transform_indices = @transform_4, window_bounds = array<i64: 16, 128>}]} {
    %c0 = arith.constant 0 : index
    %c0_0 = arith.constant 0 : index
    %0 = vector.load %arg1[%c0, %c0_0] : memref<16x32xf32, #tpu.memory_space<vmem>>, vector<16x32xf32>
    %c0_1 = arith.constant 0 : index
    %c0_2 = arith.constant 0 : index
    %1 = vector.load %arg4[%c0_1, %c0_2] : memref<2x128xf32, #tpu.memory_space<vmem>>, vector<1x128xf32>
    %c1 = arith.constant 1 : index
    %c0_3 = arith.constant 0 : index
    %2 = vector.load %arg4[%c1, %c0_3] : memref<2x128xf32, #tpu.memory_space<vmem>>, vector<1x128xf32>
    %c0_4 = arith.constant 0 : index
    %c0_5 = arith.constant 0 : index
    %3 = vector.load %arg2[%c0_4, %c0_5] : memref<32x128xf32, #tpu.memory_space<vmem>>, vector<32x128xf32>
    %cst = arith.constant dense<0.000000e+00> : vector<16x128xf32>
    %4 = tpu.matmul %0, %3, %cst {dimension_numbers = #tpu.dot_dimension_numbers<[1], [0], [0], [1], [0, 0, 1, 1], [], []>} : vector<16x32xf32>, vector<32x128xf32>, vector<16x128xf32> -> vector<16x128xf32>
    %5 = vector.broadcast %1 : vector<1x128xf32> to vector<16x128xf32>
    %6 = arith.addf %4, %5 : vector<16x128xf32>
    %7 = arith.negf %6 : vector<16x128xf32>
    %8 = math.exp %7 : vector<16x128xf32>
    %cst_6 = arith.constant 1.000000e+00 : f32
    %9 = vector.broadcast %cst_6 : f32 to vector<16x128xf32>
    %10 = arith.addf %9, %8 : vector<16x128xf32>
    %11 = arith.divf %9, %10 : vector<16x128xf32>
    %12 = arith.mulf %6, %11 : vector<16x128xf32>
    %c0_7 = arith.constant 0 : index
    %c0_8 = arith.constant 0 : index
    %13 = vector.load %arg3[%c0_7, %c0_8] : memref<128x128xf32, #tpu.memory_space<vmem>>, vector<128x128xf32>
    %cst_9 = arith.constant dense<0.000000e+00> : vector<16x128xf32>
    %14 = tpu.matmul %12, %13, %cst_9 {dimension_numbers = #tpu.dot_dimension_numbers<[1], [0], [0], [1], [0, 0, 1, 1], [], []>} : vector<16x128xf32>, vector<128x128xf32>, vector<16x128xf32> -> vector<16x128xf32>
    %15 = vector.broadcast %2 : vector<1x128xf32> to vector<16x128xf32>
    %16 = arith.addf %14, %15 : vector<16x128xf32>
    %17 = arith.truncf %16 : vector<16x128xf32> to vector<16x128xbf16>
    %c0_10 = arith.constant 0 : index
    %c0_11 = arith.constant 0 : index
    %18 = vector.load %arg5[%c0_10, %c0_11] : memref<16x128xbf16, #tpu.memory_space<vmem>>, vector<16x128xbf16>
    tpu.vector_store %arg5[%c0_10, %c0_11], %17 {strides = array<i32>} : memref<16x128xbf16, #tpu.memory_space<vmem>>, vector<16x128xbf16>,
    return
  }
  func.func @transform_0(%arg0: i32) -> (i32, i32) {
    %c0_i32 = arith.constant 0 : i32
    %c0_i32_0 = arith.constant 0 : i32
    return %arg0, %c0_i32 : i32, i32
  }
  func.func @transform_1(%arg0: i32) -> (i32, i32) {
    %c0_i32 = arith.constant 0 : i32
    %c0_i32_0 = arith.constant 0 : i32
    %c0_i32_1 = arith.constant 0 : i32
    return %c0_i32, %c0_i32_0 : i32, i32
  }
  func.func @transform_2(%arg0: i32) -> (i32, i32) {
    %c0_i32 = arith.constant 0 : i32
    %c0_i32_0 = arith.constant 0 : i32
    %c0_i32_1 = arith.constant 0 : i32
    return %c0_i32, %c0_i32_0 : i32, i32
  }
  func.func @transform_3(%arg0: i32) -> (i32, i32) {
    %c0_i32 = arith.constant 0 : i32
    %c0_i32_0 = arith.constant 0 : i32
    %c0_i32_1 = arith.constant 0 : i32
    return %c0_i32, %c0_i32_0 : i32, i32
  }
  func.func @transform_4(%arg0: i32) -> (i32, i32) {
    %c0_i32 = arith.constant 0 : i32
    %c0_i32_0 = arith.constant 0 : i32
    return %arg0, %c0_i32 : i32, i32
  }
}

</mosaic_0001>

<bundles_post_ra>
// kernel: tpu_custom_call.1
= control target key start
LH: loop header
LB: loop body
LE: loop exit
PB: predicated region body
PF: predicated region fallthrough
CT: control target
= control target key end

     0   :  { %9 = vsyncpa [#allocation3], 0  ;;  %s1139_s0 = inlined_call_operand.hbm [shape: f32[32,32], index: 0, kind: input, shape index: {}]   ;;  %s1140_s1 = inlined_call_operand.hbm [shape: f32[32,128], index: 1, kind: input, shape index: {}]   ;;  %s1141_s2 = inlined_call_operand.hbm [shape: f32[128,128], index: 2, kind: input, shape index: {}]   ;;  %s1142_s3 = inlined_call_operand.vmem [shape: f32[2,128], index: 3, kind: input, shape index: {}]   ;;  %s1143_s4 = inlined_call_operand.hbm [shape: bf16[32,128], index: 4, kind: output, shape index: {}]  }
   0x1   :  { %11 = vsyncpa [#allocation3 + $0x1], 0 }
   0x2   :  { %12 = vsyncpa [#allocation6], 0 }
   0x3   :  { %13 = vsyncpa [#allocation4], 0 }
   0x4   :  { %15 = vsyncpa [#allocation4 + $0x1], 0  ;;  %s933_s15 = smov 0   ;;  %s935_s16 = smov 0  }
   0x5   :  { %s937_s17 = smov 0   ;;  %s939_s18 = smov 0  }
   0x6 LB: > { %s954_s19 = sadd.s32 4294967295, %s898_s18   ;;  %s566_s20 = sadd.s32 4294967294, %s898_s18   ;;  %s898_s18 = sphi %s939_s18, %s1164_s18   ;;  %s894_s17 = sphi %s937_s17, %s1163_s17   ;;  %s890_s16 = sphi %s935_s16, %s1162_s16   ;;  %s886_s15 = sphi %s933_s15, %s1161_s15  }
   0x7   : > { %p41_p0 = scmp.ne.s32.totalorder %s890_s16, %s886_s15  ;;  %p1144_p1 = scmp.eq.s32.totalorder %s954_s19, 0 }
   0x8   : > { %p128_p2 = scmp.eq.s32.totalorder %s954_s19, 1  ;;  %p134_p3 = scmp.eq.s32.totalorder %s566_s20, 1 }
   0x9   : > { %p963_p4 = por %p1144_p1, %p41_p0  ;;  %p567_p5 = scmp.ge.s32.totalorder %s898_s18, 1 }
   0xa   : > { %p968_p6 = por %p134_p3, %p41_p0  ;;  %p141_p7 = scmp.lt.s32.totalorder %s898_s18, 3 }
   0xb   : > { %s1148_s21 = scalar_select %p963_p4, 1, 0 }
   0xc   : > { %s1149_s22 = scalar_select %p968_p6, 1, 0 }
   0xd   : > { %p973_p8 = pnand %p567_p5, %p141_p7  ;;  %s900_s24 = smov [#allocation5]  }
   0xe   : > { %s153_s25 = sshll.u32 %s900_s24, 4  ;;  %s901_s27 = smov [#allocation7]   ;;  %s154_s25 = int_to_ptr.vmem [resolvable:$true] %s153_s25 }
   0xf   : > { %s1150_s23 = scalar_select %p973_p8, 1, 0 }
  0x10   : > { %p683_p9 = pneg %p973_p8  ;;  %s166_s28 = sshll.u32 %s901_s27, 4  ;;  %s167_s28 = int_to_ptr.vmem [resolvable:$true] %s166_s28 }
  0x11   : > { %s761_s29 = scalar_lea.vmem %s154_s25, 512  ;;  %p769_p5 = scmp.lt.s32.totalorder %s154_s25, %s154_s25 }
  0x12   : > { %p982_p11 = pnand %p683_p9, %p1144_p1  ;;  %p762_p13 = scmp.ne.s32.totalorder %s154_s25, %s761_s29 }
  0x13   : > { %p770_p7 = scmp.lt.s32.totalorder %s761_s29, %s761_s29 }
  0x14   : > { %p752_p12 = pneg %p982_p11 }
  0x15   : > { %p771_p10 = por %p770_p7, %p769_p5 }
  0x16   : > { %p764_p0 = pnand %p762_p13, %p752_p12 }
  0x18   : > { %p765_p3 = pneg %p764_p0 }
  0x1a   : > { %p772_p9 = pnand %p771_p10, %p765_p3 }
  0x1c   : > { %775 = shalt.err (!%p772_p9)
}
  0x1d   : > { %s902_s30 = smov 128   ;;  %s903_s5 = smov 8  }
  0x1e   : > { %686 = dma.hbm_to_vmem [thread:$0]  (!%p982_p11), %s1140_s1, 512, %s154_s25, [#allocation6], %s902_s30, %s902_s30, %s903_s5  }
  0x1f   : > { %s787_s8 = scalar_lea.vmem %s167_s28, 2048  ;;  %p795_p10 = scmp.lt.s32.totalorder %s167_s28, %s167_s28 }
  0x20   : > { %p788_p13 = scmp.ne.s32.totalorder %s167_s28, %s787_s8  ;;  %p796_p3 = scmp.lt.s32.totalorder %s787_s8, %s787_s8 }
  0x22   : > { %p790_p0 = pnand %p788_p13, %p752_p12  ;;  %p797_p7 = por %p796_p3, %p795_p10 }
  0x24   : > { %p791_p5 = pneg %p790_p0 }
  0x26   : > { %p798_p9 = pnand %p797_p7, %p791_p5 }
  0x28   : > { %801 = shalt.err (!%p798_p9)
}
  0x29   : > { %689 = dma.hbm_to_vmem [thread:$0]  (!%p982_p11), %s1141_s2, 2048, %s167_s28, [#allocation6], %s902_s30, %s902_s30, %s903_s5  }
  0x2a   : > { %s1011_s11 = sadd.s32 1, %s898_s18   ;;  %s28_s12 = sadd.s32 1, %s894_s17 }
  0x2b   : > { %s25_s13 = ssub.s32 %s898_s18, %s1011_s11  ;;  %p35_p12 = scmp.ne.s32.totalorder %s894_s17, %s890_s16 }
  0x2c   : > { %p26_p13 = scmp.eq.s32.totalorder %s25_s13, 0  ;;  %p36_p0 = scmp.eq.s32.totalorder %s898_s18, 0 }
  0x2d   : > { %p1021_p5 = por %p128_p2, %p35_p12  ;;  %p700_p10 = scmp.lt.s32.totalorder %s898_s18, 2 }
  0x2e   : > { %s1027_s20 = scalar_select %p26_p13, %s894_s17, %s28_s12  }
  0x2f   : > { %s1152_s14 = scalar_select %p1021_p5, 1, 0 }
  0x30   : > { %p37_p3 = por %p36_p0, %p35_p12  ;;  %s183_s24 = sand.u32 1, %s894_s17  }
  0x31   : > { %s571_s25 = sshll.u32 %s183_s24, 4  ;;  %s592_s26 = sshll.u32 %s898_s18, 8 }
  0x32   : > { %s1034_s29 = scalar_lea.hbm %s1139_s0, %s592_s26  ;;  %s187_s6 = scalar_lea.vmem [#allocation2], %s571_s25 }
  0x33   : > { %s194_s7 = sshll.u32 %s187_s6, 4  ;;  %p1038_p2 = pnand %p700_p10, %p37_p3  ;;  %s1036_s7 = int_to_ptr.vmem [resolvable:$true] %s194_s7 }
  0x34   : > { %s1042_s9 = scalar_lea.sflag [#allocation3], %s183_s24  ;;  %s802_s10 = scalar_lea.hbm %s1034_s29, 256 }
  0x35   : > { %p803_p11 = scmp.ne.s32.totalorder %s1034_s29, %s802_s10  ;;  %p804_p7 = pneg %p1038_p2 }
  0x36   : > { %s807_s25 = scalar_lea.hbm %s1139_s0, 512  ;;  %p808_p13 = scmp.lt.s32.totalorder %s1034_s29, %s1139_s0 }
  0x37   : > { %p805_p9 = pnand %p804_p7, %p803_p11  ;;  %p809_p0 = scmp.lt.s32.totalorder %s807_s25, %s802_s10 }
  0x39   : > { %p806_p12 = pneg %p805_p9  ;;  %p810_p10 = por %p809_p0, %p808_p13 }
  0x3b   : > { %p811_p3 = pnand %p810_p10, %p806_p12 }
  0x3d   : > { %814 = shalt.err (!%p811_p3)
}
  0x3e   : > { %s815_s24 = scalar_lea.vmem %s1036_s7, 256  ;;  %s904_s28 = smov [#allocation2]  }
  0x3f   : > { %p816_p1 = scmp.ne.s32.totalorder %s1036_s7, %s815_s24  ;;  %s820_s6 = sshll.u32 %s904_s28, 4  ;;  %s821_s6 = int_to_ptr.vmem [resolvable:$false] %s820_s6 }
  0x40   : > { %s822_s12 = scalar_lea.vmem %s821_s6, 512  ;;  %p823_p9 = scmp.lt.s32.totalorder %s1036_s7, %s821_s6 }
  0x41   : > { %p818_p6 = pnand %p816_p1, %p804_p7  ;;  %p824_p5 = scmp.lt.s32.totalorder %s822_s12, %s815_s24 }
  0x43   : > { %p819_p11 = pneg %p818_p6  ;;  %p825_p4 = por %p824_p5, %p823_p9 }
  0x45   : > { %p826_p8 = pnand %p825_p4, %p819_p11 }
  0x47   : > { %829 = shalt.err (!%p826_p8)
}
  0x48   : > { %693 = dma.hbm_to_vmem [thread:$0]  (!%p1038_p2), %s1034_s29, 256, %s1036_s7, %s1042_s9, %s902_s30, %s902_s30, %s903_s5  }
  0x49   : > { %p1154_p1 = scmp.ne.s32.totalorder %s1150_s23, 0 }
  0x4a   : > { %s1069_s10 = sand.u32 (!%p1154_p1), 1, %s890_s16   ;;  %p1155_p4 = scmp.ne.s32.totalorder (!%p1154_p1), %s1148_s21, 0 }
  0x4b   : > { %206 = sbr.rel (%p1154_p1) target bundleno = 538 (0x21a), region = 36  ;;  %s575_s13 = sshll.u32 (!%p1154_p1), %s1069_s10, 4 }
  0x4c   : > { %s209_s25 = scalar_lea.sflag (!%p1154_p1), [#allocation3], %s1069_s10  ;;  %s212_s26 = scalar_lea.vmem (!%p1154_p1), [#allocation2], %s575_s13 }
  0x50   : > { %873 = dma.done.wait (%p1155_p4), %s209_s25, 256  }
  0x51   : > { %875 = vsyncadd (%p1155_p4), %s209_s25, 4294967040  ;;  %p1156_p6 = scmp.eq.s32.totalorder %s954_s19, 0 }
  0x53   : > { %877 = dma.done.wait (%p1156_p6), [#allocation6], 2560   ;;  %p1157_p8 = pmov %p1156_p6 }
  0x54   : > { %vm259_vm0 = vcmask 261120   ;;  %v254_v0 = vld [vmem:[#allocation5 + $0x18] sm:$0xff]  ;;  %v253_v1 = vld [vmem:[#allocation5 + $0x10] sm:$0xff]  ;;  %v252_v3 = vld [vmem:[#allocation5 + $0x8] sm:$0xff]  ;;  %s578_s30 = sshll.u32 %s1069_s10, 3  ;;  %s595_s9 = sshll.u32 %s954_s19, 7 }
  0x55   : > { %879 = vsyncadd (%p1157_p8), [#allocation6], 4294964736  ;;  %625 = vmatprep.subr.mxu0 %v254_v0  ;;  %v247_v2 = vld [vmem:[%s212_s26] sm:$0xff]  ;;  %v248_v5 = vld [vmem:[%s212_s26 + $0x8] sm:$0xff]  ;;  %s244_s7 = scalar_lea.vmem [#allocation8], %s578_s30  ;;  %s1096_s28 = scalar_lea.hbm %s1143_s4, %s595_s9 }
  0x56   : > { %626 = vmatpush3.msra.mxu0 %v254_v0  ;;  %633 = vmatprep.mubr.msk.f32.mxu0 %vm259_vm0, %v247_v2  ;;  %v251_v4 = vld [vmem:[#allocation5] sm:$0xff]  ;;  %v370_v6 = vld [vmem:[#allocation7 + $0x78] sm:$0xff]  ;;  %v369_v7 = vld [vmem:[#allocation7 + $0x70] sm:$0xff]  ;;  %s474_s8 = sshll.u32 %s244_s7, 4  ;;  %s461_s6 = scalar_lea.sflag [#allocation4], %s1069_s10  ;;  %s1091_s8 = int_to_ptr.vmem [resolvable:$true] %s474_s8 }
  0x57   : > { %627 = vmatprep.subr.mxu0 %v253_v1  ;;  %636 = vmatprep.subr.mxu1 %v370_v6  ;;  %v368_v8 = vld [vmem:[#allocation7 + $0x68] sm:$0xff]  ;;  %v367_v9 = vld [vmem:[#allocation7 + $0x60] sm:$0xff]  ;;  %v366_v10 = vld [vmem:[#allocation7 + $0x58] sm:$0xff]  ;;  %s830_s12 = scalar_lea.vmem %s1091_s8, 128  ;;  %p1158_p2 = scmp.ne.s32.totalorder %s1152_s14, 0 }
  0x58   : > { %628 = vmatpush3.msra.mxu0 %v253_v1  ;;  %637 = vmatpush3.msra.mxu1 %v370_v6  ;;  %v365_v11 = vld [vmem:[#allocation7 + $0x50] sm:$0xff]  ;;  %v364_v12 = vld [vmem:[#allocation7 + $0x48] sm:$0xff]  ;;  %v363_v13 = vld [vmem:[#allocation7 + $0x40] sm:$0xff]  ;;  %p831_p5 = scmp.ne.s32.totalorder %s1091_s8, %s830_s12  ;;  %s905_s19 = smov [#allocation8]  }
  0x59   : > { %629 = vmatprep.subr.mxu0 %v252_v3  ;;  %638 = vmatprep.subr.mxu1 %v369_v7  ;;  %v362_v14 = vld [vmem:[#allocation7 + $0x38] sm:$0xff]  ;;  %v361_v15 = vld [vmem:[#allocation7 + $0x30] sm:$0xff]  ;;  %v360_v16 = vld [vmem:[#allocation7 + $0x28] sm:$0xff]  ;;  %s834_s13 = sshll.u32 %s905_s19, 4  ;;  %s835_s13 = int_to_ptr.vmem [resolvable:$false] %s834_s13 }
  0x5a   : > { %630 = vmatpush3.msra.mxu0 %v252_v3  ;;  %639 = vmatpush3.msra.mxu1 %v369_v7  ;;  %v359_v17 = vld [vmem:[#allocation7 + $0x20] sm:$0xff]  ;;  %v358_v18 = vld [vmem:[#allocation7 + $0x18] sm:$0xff]  ;;  %v357_v19 = vld [vmem:[#allocation7 + $0x10] sm:$0xff]  ;;  %p832_p7 = pnand %p831_p5, %p1158_p2  ;;  %s836_s25 = scalar_lea.vmem %s835_s13, 256 }
  0x5b   : > { %631 = vmatprep.subr.mxu0 %v251_v4  ;;  %640 = vmatprep.subr.mxu1 %v368_v8  ;;  %v356_v20 = vld [vmem:[#allocation7 + $0x8] sm:$0xff]  ;;  %v355_v21 = vld [vmem:[#allocation7] sm:$0xff]  ;;  %p837_p13 = scmp.lt.s32.totalorder %s1091_s8, %s835_s13  ;;  %p838_p0 = scmp.lt.s32.totalorder %s836_s25, %s830_s12 }
  0x5c   : > { %632 = vmatpush3.msra.mxu0 %v251_v4  ;;  %641 = vmatpush3.msra.mxu1 %v368_v8  ;;  %v579_v22 = vld [vmem:[%s1142_s3] ss:$0 sm:$0xff]  ;;  %v584_v38 = vld [vmem:[%s1142_s3 + $0x1] ss:$0 sm:$0xff]  ;;  %p833_p12 = pneg %p832_p7 }
  0x5d   : > { %634 = vmatmul.mubr.msk.f32.vlgmr.msra.gmra.mxu0 %vm259_vm0, %v248_v5  ;;  %642 = vmatprep.subr.mxu1 %v367_v9  ;;  %p839_p10 = por %p838_p0, %p837_p13 }
  0x5e   : > { %643 = vmatpush3.msra.mxu1 %v367_v9 }
  0x5f   : > { %644 = vmatprep.subr.mxu1 %v366_v10  ;;  %p840_p3 = pnand %p839_p10, %p833_p12 }
  0x60   : > { %645 = vmatpush3.msra.mxu1 %v366_v10 }
  0x61   : > { %646 = vmatprep.subr.mxu1 %v365_v11 }
  0x62   : > { %647 = vmatpush3.msra.mxu1 %v365_v11 }
  0x63   : > { %648 = vmatprep.subr.mxu1 %v364_v12 }
  0x64   : > { %649 = vmatpush3.msra.mxu1 %v364_v12 }
  0x65   : > { %650 = vmatprep.subr.mxu1 %v363_v13 }
  0x66   : > { %651 = vmatpush3.msra.mxu1 %v363_v13 }
  0x67   : > { %652 = vmatprep.subr.mxu1 %v362_v14 }
  0x68   : > { %653 = vmatpush3.msra.mxu1 %v362_v14 }
  0x69   : > { %654 = vmatprep.subr.mxu1 %v361_v15 }
  0x6a   : > { %655 = vmatpush3.msra.mxu1 %v361_v15 }
  0x6b   : > { %656 = vmatprep.subr.mxu1 %v360_v16 }
  0x6c   : > { %657 = vmatpush3.msra.mxu1 %v360_v16 }
  0x6d   : > { %658 = vmatprep.subr.mxu1 %v359_v17 }
  0x6e   : > { %659 = vmatpush3.msra.mxu1 %v359_v17 }
  0x6f   : > { %660 = vmatprep.subr.mxu1 %v358_v18 }
  0x70   : > { %661 = vmatpush3.msra.mxu1 %v358_v18 }
  0x71   : > { %662 = vmatprep.subr.mxu1 %v357_v19 }
  0x72   : > { %663 = vmatpush3.msra.mxu1 %v357_v19 }
  0x73   : > { %664 = vmatprep.subr.mxu1 %v356_v20 }
  0x74   : > { %665 = vmatpush3.msra.mxu1 %v356_v20 }
  0x75   : > { %666 = vmatprep.subr.mxu1 %v355_v21 }
  0x76   : > { %667 = vmatpush3.msra.mxu1 %v355_v21 }
 0x11d   : > { %v635_v23 = vpop.f32.mrf.mxu0 }
 0x11e   : > { %v338_v24 = vadd.f32 %v635_v23, %v579_v22 }
 0x11f   : > { %v332_v25 = vpop.f32.mrf.mxu0 }
 0x120   : > { %v583_v26 = vmul.f32 -1.442695, %v338_v24  ;;  %v333_v27 = vadd.f32 %v579_v22, %v332_v25 }
 0x122   : > { %742 = vpow2.f32 %v583_v26  ;;  %v582_v28 = vmul.f32 -1.442695, %v333_v27 }
 0x124   : > { %744 = vpow2.f32 %v582_v28 }
 0x12f   : > { %v743_v29 = vpop.eup %742 }
 0x130   : > { %v348_v30 = vadd.f32 1.0, %v743_v29 }
 0x131   : > { %v745_v31 = vpop.eup %744 }
 0x132   : > { %v347_v32 = vadd.f32 1.0, %v745_v31  ;;  %746 = vrcp.f32 %v348_v30 }
 0x134   : > { %748 = vrcp.f32 %v347_v32 }
 0x13f   : > { %v747_v33 = vpop.eup %746 }
 0x140   : > { %v354_v36 = vmul.f32 %v747_v33, %v338_v24 }
 0x141   : > { %v749_v34 = vpop.eup %748 }
 0x142   : > { %v353_v35 = vmul.f32 %v749_v34, %v333_v27 }
 0x144   : > { %668 = vmatprep.mubr.f32.mxu1 %v353_v35 }
 0x145   : > { %669 = vmatmul.mubr.f32.vlgmr.msra.gmra.mxu1 %v354_v36 }
 0x205   : > { %v670_v37 = vpop.f32.mrf.mxu1 }
 0x206   : > { %v447_v40 = vadd.f32 %v670_v37, %v584_v38 }
 0x207   : > { %v441_v39 = vpop.f32.mrf.mxu1 }
 0x208   : > { %v442_v41 = vadd.f32 %v584_v38, %v441_v39 }
 0x20a   : > { %v599_v42 = vpack.c.bf16 %v447_v40, %v442_v41 }
 0x20c   : > { %600 = vst [vmem:[%s244_s7] sm:$0xff] %v599_v42  }
 0x20d   : > { %843 = shalt.err (!%p840_p3)
}
 0x20e   : > { %s844_s26 = scalar_lea.hbm %s1096_s28, 128  ;;  %s848_s30 = scalar_lea.hbm %s1143_s4, 256 }
 0x20f   : > { %p845_p11 = scmp.ne.s32.totalorder %s1096_s28, %s844_s26  ;;  %p849_p4 = scmp.lt.s32.totalorder %s1096_s28, %s1143_s4 }
 0x210   : > { %p850_p6 = scmp.lt.s32.totalorder %s848_s30, %s844_s26 }
 0x211   : > { %p846_p9 = pnand %p845_p11, %p1158_p2 }
 0x212   : > { %p851_p8 = por %p850_p6, %p849_p4 }
 0x213   : > { %p847_p1 = pneg %p846_p9 }
 0x215   : > { %p852_p5 = pnand %p851_p8, %p847_p1 }
 0x217   : > { %855 = shalt.err (!%p852_p5)
}
 0x218   : > { %s906_s7 = smov 64   ;;  %s907_s9 = smov 4  }
 0x219   : > { %681 = dma.vmem_to_hbm [thread:$0]  (%p1158_p2), %s1091_s8, 128, %s1096_s28, %s461_s6, %s906_s7, %s906_s7, %s907_s9  }
 0x21a PF: > { %s489_s27 = sand.u32 1, %s886_s15   ;;  %p1159_p7 = scmp.ne.s32.totalorder %s1149_s22, 0 }
 0x21b   : > { %p1160_p12 = scmp.ge.s32.totalorder %s898_s18, 2  ;;  %s490_s24 = scalar_lea.sflag [#allocation4], %s489_s27 }
 0x21d   : > { %p695_p13 = pnand %p1160_p12, %p1159_p7 }
 0x21f   : > { %p696_p0 = pneg %p695_p13 }
 0x221   : > { %881 = dma.done.wait (%p696_p0), %s490_s24, 128  }
 0x222   : > { %883 = vsyncadd (%p696_p0), %s490_s24, 4294967168  ;;  %p18_p10 = scmp.ge.s32.totalorder %s1011_s11, 4   ;;  %s1161_s15 = smov %s890_s16 }
 0x223   : > { %s1162_s16 = smov %s894_s17  ;;  %s1163_s17 = smov %s1027_s20 }
 0x224   : > { %s1164_s18 = smov %s1011_s11  ;;  %20 = sbr.rel (!%p18_p10) target bundleno = 6 (0x6), region = 89 }
 0x229   :  { %495 = vsyncpa [#allocation3], 1 }
 0x22a   :  { %497 = vsyncpa [#allocation3 + $0x1], 1 }
 0x22b   :  { %498 = vsyncpa [#allocation6], 1 }
 0x22c   :  { %499 = vsyncpa [#allocation4], 1 }
 0x22d   :  { %501 = vsyncpa [#allocation4 + $0x1], 1 }

</bundles_post_ra>
